<compile_context>
chip_gen: v7x
topology: tpu7x:2x2x1
jax: 0.10.0
libtpu: 0.0.40
codegen_flags: <defaults>
</compile_context>

<pallas_src>
import functools

import jax
import jax.numpy as jnp
from jax.experimental import pallas as pl
from jax.experimental.pallas import tpu as pltpu


def _ensemble_kernel(w_ref, x_ref, y_ref, pred_ref, loss_ref, *, B, C, K, TB):
    # w_ref:   (1, K)       VMEM  ensemble weight logits
    # x_ref:   (K, TB, Cp)  VMEM  per-model logits, K-major (dense (TB,Cp) slices)
    # y_ref:   (TB, Cp)     VMEM  multi-hot labels (padded lanes are 0)
    # pred_ref:(TB, Cp)     VMEM  weighted prediction (lane-dense store)
    # loss_ref:(1, 1)       SMEM  per-block partial loss sum

    # softmax over the ensemble dimension (K tiny; negligible per grid step)
    w = w_ref[...]                                            # (1, K)
    w_max = jnp.max(w, axis=-1, keepdims=True)
    w_exp = jnp.exp(w - w_max)
    w_sm = w_exp * pl.reciprocal(jnp.sum(w_exp, axis=-1, keepdims=True),
                                 approx=False)                # (1, K), EUP recip

    # einsum('bi,bij->bj') with the weight identical across batch.
    # K is static and tiny -> unrolled broadcast-multiply/add on dense tiles
    # (VPU only; the MXU would be <4% utilized for such a small contraction).
    pred = x_ref[0] * w_sm[:, 0:1]                            # (TB, Cp)
    for k in range(1, K):
        pred = pred + x_ref[k] * w_sm[:, k:k + 1]
    pred_ref[...] = pred.astype(pred_ref.dtype)

    # multilabel categorical cross entropy
    y = y_ref[...]                                            # (TB, Cp)
    big = jnp.float32(1e12)
    Cp = pred.shape[-1]

    y_pred = (1.0 - 2.0 * y) * pred
    y_pred_neg = y_pred - y * big
    y_pred_pos = y_pred - (1.0 - y) * big

    if C != Cp:
        # force padded lanes to -big so they vanish from the logsumexp
        col = jax.lax.broadcasted_iota(jnp.int32, (TB, Cp), 1)
        lane_ok = col < C
        y_pred_neg = jnp.where(lane_ok, y_pred_neg, -big)
        y_pred_pos = jnp.where(lane_ok, y_pred_pos, -big)

    def lse_with_zero(v):
        # logsumexp over the last dim of concat([v, 0]) == logaddexp(lse(v), 0)
        m = jnp.maximum(jnp.max(v, axis=-1, keepdims=True), 0.0)
        s = jnp.sum(jnp.exp(v - m), axis=-1, keepdims=True) + jnp.exp(-m)
        return m + jnp.log(s)                                 # (TB, 1)

    per_row = lse_with_zero(y_pred_neg) + lse_with_zero(y_pred_pos)  # (TB, 1)

    if B % TB != 0:
        # mask rows that are pure batch padding
        row = pl.program_id(0) * TB + jax.lax.broadcasted_iota(
            jnp.int32, (TB, 1), 0)
        per_row = jnp.where(row < B, per_row, 0.0)

    # partial sum for this block -> single scalar store to SMEM
    loss_ref[0, 0] = jnp.sum(per_row)


def ensemble_forward(weight, x, y, *, tb=None):
    """weight: (K,), x: (B, K, C), y: (B, C) -> (pred (B, C), loss scalar)."""
    B, K, C = x.shape
    Cp = max(128, pl.cdiv(C, 128) * 128)           # lane-dense last dim

    if tb is None:
        # target ~2 MiB per x block (BlockSpec double-buffers it), mult of 8
        rows = (2 * 1024 * 1024) // max(K * Cp * 4, 1)
        tb = int(min(512, max(8, (rows // 8) * 8)))
    tb = int(min(tb, ((B + 7) // 8) * 8))          # don't over-tile tiny batches
    tb = max(8, (tb // 8) * 8)
    Bp = pl.cdiv(B, tb) * tb
    nb = Bp // tb

    # K-major, padded, f32 inputs. The transpose fuses into the padding copy.
    xp = jnp.zeros((K, Bp, Cp), jnp.float32).at[:, :B, :C].set(
        jnp.transpose(x.astype(jnp.float32), (1, 0, 2)))
    yp = jnp.zeros((Bp, Cp), jnp.float32).at[:B, :C].set(y.astype(jnp.float32))
    w2d = weight.reshape(1, K).astype(jnp.float32)

    kernel = functools.partial(_ensemble_kernel, B=B, C=C, K=K, TB=tb)

    cost = pl.CostEstimate(
        flops=2 * B * K * C + 6 * B * C,
        transcendentals=2 * B * C + K,
        bytes_accessed=(Bp * K * Cp + 2 * Bp * Cp) * 4,
    )

    pred_p, loss_parts = pl.pallas_call(
        kernel,
        grid=(nb,),
        in_specs=[
            pl.BlockSpec((1, K), lambda b: (0, 0)),            # weight (untiled)
            pl.BlockSpec((K, tb, Cp), lambda b: (0, b, 0)),    # x tile (K-major)
            pl.BlockSpec((tb, Cp), lambda b: (b, 0)),          # y tile
        ],
        out_specs=(
            pl.BlockSpec((tb, Cp), lambda b: (b, 0)),          # pred tile
            pl.BlockSpec((1, 1), lambda b: (b, 0),
                         memory_space=pltpu.MemorySpace.SMEM),  # partial loss
        ),
        out_shape=(
            jax.ShapeDtypeStruct((Bp, Cp), jnp.float32),
            jax.ShapeDtypeStruct((nb, 1), jnp.float32),
        ),
        compiler_params=pltpu.CompilerParams(
            dimension_semantics=("parallel",),       # no carry across B blocks
        ),
        cost_estimate=cost,
    )(w2d, xp, yp)

    pred = pred_p[:B, :C]
    loss = jnp.sum(loss_parts) / B                  # mean over the real batch
    return pred, loss


def _reference(weight, x, y):
    w = jax.nn.softmax(weight)
    pred = jnp.einsum('i,bic->bc', w, x)
    big = 1e12
    yp = (1.0 - 2.0 * y) * pred
    yneg = jnp.concatenate([yp - y * big, jnp.zeros_like(yp[..., :1])], axis=-1)
    ypos = jnp.concatenate([yp - (1.0 - y) * big, jnp.zeros_like(yp[..., :1])],
                           axis=-1)
    loss = jax.nn.logsumexp(yneg, axis=-1) + jax.nn.logsumexp(ypos, axis=-1)
    return pred, loss.mean()


if __name__ == "__main__":
    B, K, C = 2, 4, 16
    key = jax.random.PRNGKey(0)
    kw, kx, ky = jax.random.split(key, 3)

    # deterministic parameter init (analog of torch.randn(k))
    weight = jax.random.normal(kw, (K,), dtype=jnp.float32)
    # inputs: per-model logits x and multi-hot labels y
    x = jax.random.normal(kx, (B, K, C), dtype=jnp.float32)
    y = (jax.random.uniform(ky, (B, C)) < 0.3).astype(jnp.float32)

    # TODO(synk): the task == 'TASK1' (nn.CrossEntropyLoss) branch of MyModel
    # is not implemented; this kernel covers the multilabel branch only.
    pred, loss = ensemble_forward(weight, x, y)
    jax.block_until_ready((pred, loss))

    ref_pred, ref_loss = _reference(weight, x, y)
    assert jnp.allclose(pred, ref_pred, atol=1e-5, rtol=1e-5)
    assert jnp.allclose(loss, ref_loss, atol=1e-4, rtol=1e-4)

    print("KERNEL_OK")
</pallas_src>

<mosaic_0001>
module attributes {stable_mosaic.version = 11 : i64} {
  func.func @_ensemble_kernel(%arg0: i32, %arg1: memref<1x4xf32, #tpu.memory_space<vmem>>, %arg2: memref<4x8x128xf32, #tpu.memory_space<vmem>>, %arg3: memref<8x128xf32, #tpu.memory_space<vmem>>, %arg4: memref<8x128xf32, #tpu.memory_space<vmem>>, %arg5: memref<1x1xf32, #tpu.memory_space<smem>>) attributes {dimension_semantics = [#tpu.dimension_semantics<parallel>], iteration_bounds = array<i64: 1>, scalar_prefetch = 0 : i64, scratch_operands = 0 : i64, tpu.core_type = #tpu.core_type<tc>, window_params = [{pipeline_mode = #tpu.pipeline_mode<synchronous>, transform_indices = @transform_0, window_bounds = array<i64: 1, 4>}, {transform_indices = @transform_1, window_bounds = array<i64: 4, 8, 128>}, {transform_indices = @transform_2, window_bounds = array<i64: 8, 128>}, {transform_indices = @transform_3, window_bounds = array<i64: 8, 128>}, {transform_indices = @transform_4, window_bounds = array<i64: 1, 1>}]} {
    %c0 = arith.constant 0 : index
    %c0_0 = arith.constant 0 : index
    %0 = vector.load %arg1[%c0, %c0_0] : memref<1x4xf32, #tpu.memory_space<vmem>>, vector<1x4xf32>
    %cst = arith.constant dense<0xFF800000> : vector<1xf32>
    %1 = vector.multi_reduction <maximumf>, %0, %cst [1] : vector<1x4xf32> to vector<1xf32>
    %2 = vector.shape_cast %1 : vector<1xf32> to vector<1x1xf32>
    %3 = vector.broadcast %2 : vector<1x1xf32> to vector<1x4xf32>
    %4 = arith.subf %0, %3 : vector<1x4xf32>
    %5 = math.exp %4 : vector<1x4xf32>
    %cst_1 = arith.constant dense<0.000000e+00> : vector<1xf32>
    %6 = vector.multi_reduction <add>, %5, %cst_1 [1] : vector<1x4xf32> to vector<1xf32>
    %7 = vector.shape_cast %6 : vector<1xf32> to vector<1x1xf32>
    %8 = tpu.reciprocal %7 : vector<1x1xf32> -> vector<1x1xf32>
    %9 = vector.broadcast %8 : vector<1x1xf32> to vector<1x4xf32>
    %10 = arith.mulf %5, %9 : vector<1x4xf32>
    %c0_2 = arith.constant 0 : index
    %c0_3 = arith.constant 0 : index
    %c0_4 = arith.constant 0 : index
    %11 = vector.load %arg2[%c0_2, %c0_3, %c0_4] : memref<4x8x128xf32, #tpu.memory_space<vmem>>, vector<1x8x128xf32>
    %12 = vector.shape_cast %11 : vector<1x8x128xf32> to vector<8x128xf32>
    %13 = vector.extract_strided_slice %10 {offsets = [0, 0], sizes = [1, 1], strides = [1, 1]} : vector<1x4xf32> to vector<1x1xf32>
    %14 = vector.broadcast %13 : vector<1x1xf32> to vector<8x128xf32>
    %15 = arith.mulf %12, %14 : vector<8x128xf32>
    %c1 = arith.constant 1 : index
    %c0_5 = arith.constant 0 : index
    %c0_6 = arith.constant 0 : index
    %16 = vector.load %arg2[%c1, %c0_5, %c0_6] : memref<4x8x128xf32, #tpu.memory_space<vmem>>, vector<1x8x128xf32>
    %17 = vector.shape_cast %16 : vector<1x8x128xf32> to vector<8x128xf32>
    %18 = vector.extract_strided_slice %10 {offsets = [0, 1], sizes = [1, 1], strides = [1, 1]} : vector<1x4xf32> to vector<1x1xf32>
    %19 = vector.broadcast %18 : vector<1x1xf32> to vector<8x128xf32>
    %20 = arith.mulf %17, %19 : vector<8x128xf32>
    %21 = arith.addf %15, %20 : vector<8x128xf32>
    %c2 = arith.constant 2 : index
    %c0_7 = arith.constant 0 : index
    %c0_8 = arith.constant 0 : index
    %22 = vector.load %arg2[%c2, %c0_7, %c0_8] : memref<4x8x128xf32, #tpu.memory_space<vmem>>, vector<1x8x128xf32>
    %23 = vector.shape_cast %22 : vector<1x8x128xf32> to vector<8x128xf32>
    %24 = vector.extract_strided_slice %10 {offsets = [0, 2], sizes = [1, 1], strides = [1, 1]} : vector<1x4xf32> to vector<1x1xf32>
    %25 = vector.broadcast %24 : vector<1x1xf32> to vector<8x128xf32>
    %26 = arith.mulf %23, %25 : vector<8x128xf32>
    %27 = arith.addf %21, %26 : vector<8x128xf32>
    %c3 = arith.constant 3 : index
    %c0_9 = arith.constant 0 : index
    %c0_10 = arith.constant 0 : index
    %28 = vector.load %arg2[%c3, %c0_9, %c0_10] : memref<4x8x128xf32, #tpu.memory_space<vmem>>, vector<1x8x128xf32>
    %29 = vector.shape_cast %28 : vector<1x8x128xf32> to vector<8x128xf32>
    %30 = vector.extract_strided_slice %10 {offsets = [0, 3], sizes = [1, 1], strides = [1, 1]} : vector<1x4xf32> to vector<1x1xf32>
    %31 = vector.broadcast %30 : vector<1x1xf32> to vector<8x128xf32>
    %32 = arith.mulf %29, %31 : vector<8x128xf32>
    %33 = arith.addf %27, %32 : vector<8x128xf32>
    %c0_11 = arith.constant 0 : index
    %c0_12 = arith.constant 0 : index
    %34 = vector.load %arg4[%c0_11, %c0_12] : memref<8x128xf32, #tpu.memory_space<vmem>>, vector<8x128xf32>
    tpu.vector_store %arg4[%c0_11, %c0_12], %33 {strides = array<i32>} : memref<8x128xf32, #tpu.memory_space<vmem>>, vector<8x128xf32>,
    %c0_13 = arith.constant 0 : index
    %c0_14 = arith.constant 0 : index
    %35 = vector.load %arg3[%c0_13, %c0_14] : memref<8x128xf32, #tpu.memory_space<vmem>>, vector<8x128xf32>
    %cst_15 = arith.constant 2.000000e+00 : f32
    %36 = vector.broadcast %cst_15 : f32 to vector<8x128xf32>
    %37 = arith.mulf %36, %35 : vector<8x128xf32>
    %cst_16 = arith.constant 1.000000e+00 : f32
    %38 = vector.broadcast %cst_16 : f32 to vector<8x128xf32>
    %39 = arith.subf %38, %37 : vector<8x128xf32>
    %40 = arith.mulf %39, %33 : vector<8x128xf32>
    %cst_17 = arith.constant 9.99999995E+11 : f32
    %41 = vector.broadcast %cst_17 : f32 to vector<8x128xf32>
    %42 = arith.mulf %35, %41 : vector<8x128xf32>
    %43 = arith.subf %40, %42 : vector<8x128xf32>
    %cst_18 = arith.constant 1.000000e+00 : f32
    %44 = vector.broadcast %cst_18 : f32 to vector<8x128xf32>
    %45 = arith.subf %44, %35 : vector<8x128xf32>
    %cst_19 = arith.constant 9.99999995E+11 : f32
    %46 = vector.broadcast %cst_19 : f32 to vector<8x128xf32>
    %47 = arith.mulf %45, %46 : vector<8x128xf32>
    %48 = arith.subf %40, %47 : vector<8x128xf32>
    %49 = tpu.iota {dimensions = array<i32: 1>} : vector<8x128xi32>
    %c16_i32 = arith.constant 16 : i32
    %50 = vector.broadcast %c16_i32 : i32 to vector<8x128xi32>
    %51 = arith.cmpi slt, %49, %50 : vector<8x128xi32>
    %cst_20 = arith.constant 0.000000e+00 : f32
    %cst_21 = arith.constant 9.99999995E+11 : f32
    %52 = arith.subf %cst_20, %cst_21 : f32
    %53 = vector.broadcast %52 : f32 to vector<8x128xf32>
    %54 = arith.select %51, %43, %53 : vector<8x128xi1>, vector<8x128xf32>
    %cst_22 = arith.constant 0.000000e+00 : f32
    %cst_23 = arith.constant 9.99999995E+11 : f32
    %55 = arith.subf %cst_22, %cst_23 : f32
    %56 = vector.broadcast %55 : f32 to vector<8x128xf32>
    %57 = arith.select %51, %48, %56 : vector<8x128xi1>, vector<8x128xf32>
    %cst_24 = arith.constant dense<0xFF800000> : vector<8xf32>
    %58 = vector.multi_reduction <maximumf>, %54, %cst_24 [1] : vector<8x128xf32> to vector<8xf32>
    %59 = vector.shape_cast %58 : vector<8xf32> to vector<8x1xf32>
    %cst_25 = arith.constant 0.000000e+00 : f32
    %60 = vector.broadcast %cst_25 : f32 to vector<8x1xf32>
    %61 = arith.maximumf %59, %60 : vector<8x1xf32>
    %62 = vector.broadcast %61 : vector<8x1xf32> to vector<8x128xf32>
    %63 = arith.subf %54, %62 : vector<8x128xf32>
    %64 = math.exp %63 : vector<8x128xf32>
    %cst_26 = arith.constant dense<0.000000e+00> : vector<8xf32>
    %65 = vector.multi_reduction <add>, %64, %cst_26 [1] : vector<8x128xf32> to vector<8xf32>
    %66 = vector.shape_cast %65 : vector<8xf32> to vector<8x1xf32>
    %cst_27 = arith.constant 0.000000e+00 : f32
    %67 = vector.broadcast %cst_27 : f32 to vector<8x1xf32>
    %68 = arith.subf %67, %61 : vector<8x1xf32>
    %69 = math.exp %68 : vector<8x1xf32>
    %70 = arith.addf %66, %69 : vector<8x1xf32>
    %71 = math.log %70 : vector<8x1xf32>
    %72 = arith.addf %61, %71 : vector<8x1xf32>
    %cst_28 = arith.constant dense<0xFF800000> : vector<8xf32>
    %73 = vector.multi_reduction <maximumf>, %57, %cst_28 [1] : vector<8x128xf32> to vector<8xf32>
    %74 = vector.shape_cast %73 : vector<8xf32> to vector<8x1xf32>
    %cst_29 = arith.constant 0.000000e+00 : f32
    %75 = vector.broadcast %cst_29 : f32 to vector<8x1xf32>
    %76 = arith.maximumf %74, %75 : vector<8x1xf32>
    %77 = vector.broadcast %76 : vector<8x1xf32> to vector<8x128xf32>
    %78 = arith.subf %57, %77 : vector<8x128xf32>
    %79 = math.exp %78 : vector<8x128xf32>
    %cst_30 = arith.constant dense<0.000000e+00> : vector<8xf32>
    %80 = vector.multi_reduction <add>, %79, %cst_30 [1] : vector<8x128xf32> to vector<8xf32>
    %81 = vector.shape_cast %80 : vector<8xf32> to vector<8x1xf32>
    %cst_31 = arith.constant 0.000000e+00 : f32
    %82 = vector.broadcast %cst_31 : f32 to vector<8x1xf32>
    %83 = arith.subf %82, %76 : vector<8x1xf32>
    %84 = math.exp %83 : vector<8x1xf32>
    %85 = arith.addf %81, %84 : vector<8x1xf32>
    %86 = math.log %85 : vector<8x1xf32>
    %87 = arith.addf %76, %86 : vector<8x1xf32>
    %88 = arith.addf %72, %87 : vector<8x1xf32>
    %c8_i32 = arith.constant 8 : i32
    %89 = arith.muli %arg0, %c8_i32 : i32
    %90 = tpu.iota {dimensions = array<i32: 0>} : vector<8x1xi32>
    %91 = vector.broadcast %89 : i32 to vector<8x1xi32>
    %92 = arith.addi %91, %90 : vector<8x1xi32>
    %c2_i32 = arith.constant 2 : i32
    %93 = vector.broadcast %c2_i32 : i32 to vector<8x1xi32>
    %94 = arith.cmpi slt, %92, %93 : vector<8x1xi32>
    %cst_32 = arith.constant 0.000000e+00 : f32
    %95 = vector.broadcast %cst_32 : f32 to vector<8x1xf32>
    %96 = arith.select %94, %88, %95 : vector<8x1xi1>, vector<8x1xf32>
    %97 = vector.shape_cast %96 : vector<8x1xf32> to vector<1x8x1xf32>
    %cst_33 = arith.constant dense<0.000000e+00> : vector<1xf32>
    %98 = vector.multi_reduction <add>, %97, %cst_33 [1, 2] : vector<1x8x1xf32> to vector<1xf32>
    %99 = vector.shape_cast %98 : vector<1xf32> to vector<1x1x1xf32>
    %100 = vector.extract %99[0, 0, 0] : f32 from vector<1x1x1xf32>
    %c0_34 = arith.constant 0 : index
    %c0_35 = arith.constant 0 : index
    %101 = memref.load %arg5[%c0_34, %c0_35] : memref<1x1xf32, #tpu.memory_space<smem>>
    memref.store %100, %arg5[%c0_34, %c0_35] : memref<1x1xf32, #tpu.memory_space<smem>>
    return
  }
  func.func @transform_0(%arg0: i32) -> (i32, i32) {
    %c0_i32 = arith.constant 0 : i32
    %c0_i32_0 = arith.constant 0 : i32
    %c0_i32_1 = arith.constant 0 : i32
    return %c0_i32, %c0_i32_0 : i32, i32
  }
  func.func @transform_1(%arg0: i32) -> (i32, i32, i32) {
    %c0_i32 = arith.constant 0 : i32
    %c0_i32_0 = arith.constant 0 : i32
    %c0_i32_1 = arith.constant 0 : i32
    return %c0_i32, %arg0, %c0_i32_0 : i32, i32, i32
  }
  func.func @transform_2(%arg0: i32) -> (i32, i32) {
    %c0_i32 = arith.constant 0 : i32
    %c0_i32_0 = arith.constant 0 : i32
    return %arg0, %c0_i32 : i32, i32
  }
  func.func @transform_3(%arg0: i32) -> (i32, i32) {
    %c0_i32 = arith.constant 0 : i32
    %c0_i32_0 = arith.constant 0 : i32
    return %arg0, %c0_i32 : i32, i32
  }
  func.func @transform_4(%arg0: i32) -> (i32, i32) {
    %c0_i32 = arith.constant 0 : i32
    %c0_i32_0 = arith.constant 0 : i32
    return %arg0, %c0_i32 : i32, i32
  }
}

</mosaic_0001>

<bundles_post_ra>
// kernel: tpu_custom_call.1
= control target key start
LH: loop header
LB: loop body
LE: loop exit
PB: predicated region body
PF: predicated region fallthrough
CT: control target
= control target key end

     0   :  { %10 = vsyncpa [#allocation3], 0  ;;  %s438_s0 = inlined_call_operand.hbm [shape: f32[1,4], index: 0, kind: input, shape index: {}]   ;;  %s439_s1 = inlined_call_operand.hbm [shape: f32[4,8,128], index: 1, kind: input, shape index: {}]   ;;  %s440_s2 = inlined_call_operand.hbm [shape: f32[8,128], index: 2, kind: input, shape index: {}]   ;;  %s441_s3 = inlined_call_operand.hbm [shape: f32[8,128], index: 3, kind: output, shape index: {0}]   ;;  %s442_s4 = inlined_call_operand.hbm [shape: f32[1,1], index: 4, kind: output, shape index: {1}]  }
   0x1   :  { %11 = vsyncpa [#allocation7], 0 }
   0x2   :  { %12 = vsyncpa [#allocation4], 0 }
   0x3   :  { %13 = vsyncpa [#allocation5], 0  ;;  %s338_s15 = smov [#allocation6]   ;;  %s232_s19 = scalar_lea.hbm %s439_s1, 512 }
   0x4   :  { %s29_s16 = sshll.u32 %s338_s15, 4  ;;  %p233_p0 = scmp.ne.s32.totalorder %s439_s1, %s232_s19  ;;  %s30_s16 = int_to_ptr.vmem [resolvable:$true] %s29_s16 }
   0x5   :  { %p236_p1 = scmp.lt.u32.totalorder %s232_s19, %s439_s1 }
   0x7   :  { %p238_p2 = pnand %p236_p1, %p233_p0 }
   0x9   :  { %241 = shalt.err (!%p238_p2)
}
   0xa   :  { %s242_s24 = scalar_lea.vmem %s30_s16, 512  ;;  %p247_p4 = scmp.lt.s32.totalorder %s30_s16, %s30_s16 }
   0xb   :  { %p243_p3 = scmp.ne.s32.totalorder %s30_s16, %s242_s24  ;;  %p248_p5 = scmp.lt.s32.totalorder %s242_s24, %s242_s24 }
   0xd   :  { %p249_p6 = por %p248_p5, %p247_p4 }
   0xf   :  { %p250_p7 = pnand %p249_p6, %p243_p3 }
  0x11   :  { %253 = shalt.err (!%p250_p7)
}
  0x12   :  { %s339_s25 = smov 128   ;;  %s340_s26 = smov 8  }
  0x13   :  { %35 = dma.hbm_to_vmem [thread:$0]  %s439_s1, 512, %s30_s16, [#allocation7], %s339_s25, %s339_s25, %s340_s26  }
  0x14   :  { %s341_s29 = smov [#allocation2]   ;;  %s342_s5 = smov [#allocation8]  }
  0x15   :  { %s20_s30 = sshll.u32 %s341_s29, 4  ;;  %s42_s6 = sshll.u32 %s342_s5, 4  ;;  %s21_s30 = int_to_ptr.vmem [resolvable:$true] %s20_s30  ;;  %s43_s6 = int_to_ptr.vmem [resolvable:$true] %s42_s6 }
  0x16   :  { %s254_s9 = scalar_lea.hbm %s438_s0, 16 }
  0x17   :  { %p255_p8 = scmp.ne.s32.totalorder %s438_s0, %s254_s9  ;;  %p258_p9 = scmp.lt.u32.totalorder %s254_s9, %s438_s0 }
  0x19   :  { %p260_p10 = pnand %p258_p9, %p255_p8 }
  0x1b   :  { %263 = shalt.err (!%p260_p10)
}
  0x1c   :  { %s264_s1 = scalar_lea.vmem %s21_s30, 16  ;;  %s268_s14 = scalar_lea.vmem %s21_s30, 32 }
  0x1d   :  { %p265_p11 = scmp.ne.s32.totalorder %s21_s30, %s264_s1  ;;  %p269_p12 = scmp.lt.s32.totalorder %s21_s30, %s21_s30 }
  0x1e   :  { %p270_p13 = scmp.lt.s32.totalorder %s268_s14, %s264_s1 }
  0x20   :  { %p271_p0 = por %p270_p13, %p269_p12 }
  0x22   :  { %p272_p1 = pnand %p271_p0, %p265_p11 }
  0x24   :  { %275 = shalt.err (!%p272_p1)
}
  0x25   :  { %23 = dma.hbm_to_vmem [thread:$0]  %s438_s0, 16, %s21_s30, [#allocation3]  }
  0x26   :  { %s276_s19 = scalar_lea.hbm %s440_s2, 128 }
  0x27   :  { %p277_p2 = scmp.ne.s32.totalorder %s440_s2, %s276_s19  ;;  %p280_p3 = scmp.lt.u32.totalorder %s276_s19, %s440_s2 }
  0x29   :  { %p282_p4 = pnand %p280_p3, %p277_p2 }
  0x2b   :  { %285 = shalt.err (!%p282_p4)
}
  0x2c   :  { %s286_s24 = scalar_lea.vmem %s43_s6, 128  ;;  %p291_p6 = scmp.lt.s32.totalorder %s43_s6, %s43_s6 }
  0x2d   :  { %p287_p5 = scmp.ne.s32.totalorder %s43_s6, %s286_s24  ;;  %p292_p7 = scmp.lt.s32.totalorder %s286_s24, %s286_s24 }
  0x2f   :  { %p293_p8 = por %p292_p7, %p291_p6 }
  0x31   :  { %p294_p9 = pnand %p293_p8, %p287_p5 }
  0x33   :  { %297 = shalt.err (!%p294_p9)
}
  0x34   :  { %45 = dma.hbm_to_vmem [thread:$0]  %s440_s2, 128, %s43_s6, [#allocation7]  }
  0x35   :  { %330 = dma.done.wait [#allocation3], 16  }
  0x36   :  { %331 = vsyncadd [#allocation3], 4294967280 }
  0x37   :  { %332 = dma.done.wait [#allocation7], 640  }
  0x38   :  { %333 = vsyncadd [#allocation7], 4294966656  ;;  %vm56_vm0 = vcmask 24576   ;;  %v55_v0 = vld [vmem:[#allocation2] sm:$0x1]  ;;  %v343_v7 = vmov 2   ;;  %v70_v10 = vlaneseq }
  0x39   :  { %v57_v1 = vsel %vm56_vm0, %v55_v0, -inf  ;;  %213 = vset.pattern.permute.xlu0 %v343_v7  ;;  %v344_v8 = vmov 0   ;;  %v345_v16 = vmov 1   ;;  %v346_v17 = vmov 3   ;;  %v68_v19 = vld [vmem:[#allocation6] sm:$0xff]  ;;  %v80_v20 = vld [vmem:[#allocation6 + $0x8] sm:$0xff] }
  0x3a   :  { %58 = vmax.xlane.f32.xlu0 %v57_v1  ;;  %211 = vset.pattern.permute.xlu1 %v344_v8  ;;  %v410_v11 = vshrl.u32 %v70_v10, 7  ;;  %v104_v21 = vld [vmem:[#allocation8] sm:$0xff]  ;;  %v88_v22 = vld [vmem:[#allocation6 + $0x10] sm:$0xff]  ;;  %v96_v30 = vld [vmem:[#allocation6 + $0x18] sm:$0xff]  ;;  %v114_v36 = vand.u32 127, %v70_v10  ;;  %vm156_vm3 = vcmask 7168  }
  0x3b   :  { %v105_v27 = vmul.f32 2.0, %v104_v21  ;;  %v110_v35 = vsub.f32 1.0, %v104_v21  ;;  %v108_v38 = vmul.f32 1e+12, %v104_v21  ;;  %s347_s2 = smov [#allocation9]  }
  0x3c   :  { %v72_v12 = vsub.s32 0, %v410_v11  ;;  %vm115_vm1 = vcmp.lt.s32.totalorder %v114_v36, 16  ;;  %vm154_vm2 = vcmp.lt.s32.totalorder %v410_v11, 2  ;;  %s175_s26 = sshll.u32 %s347_s2, 4  ;;  %s176_s26 = int_to_ptr.vmem [resolvable:$true] %s175_s26 }
  0x3d   :  { %v106_v34 = vsub.f32 1.0, %v105_v27  ;;  %v111_v40 = vmul.f32 1e+12, %v110_v35  ;;  %s298_s27 = scalar_lea.vmem %s176_s26, 128  ;;  %p303_p11 = scmp.lt.s32.totalorder %s176_s26, %s176_s26 }
  0x3e   :  { %p299_p10 = scmp.ne.s32.totalorder %s176_s26, %s298_s27  ;;  %p304_p12 = scmp.lt.s32.totalorder %s298_s27, %s298_s27 }
  0x40   :  { %p305_p13 = por %p304_p12, %p303_p11 }
  0x42   :  { %p306_p0 = pnand %p305_p13, %p299_p10 }
  0xc7   :  { %v59_v2 = vpop.xlane.xlu0 %58 }
  0xc8   :  { %v60_v3 = vsub.f32 %v55_v0, %v59_v2 }
  0xca   :  { %v61_v4 = vmul.f32 1.442695, %v60_v3 }
  0xcc   :  { %216 = vpow2.f32 %v61_v4 }
  0xd6   :  { %v217_v5 = vpop.eup %216 }
  0xd7   :  { %v63_v6 = vsel %vm56_vm0, %v217_v5, 0.0 }
  0xd8   :  { %64 = vadd.xlane.f32.xlu0 %v63_v6 }
 0x165   :  { %v65_v9 = vpop.xlane.xlu0 %64 }
 0x166   :  { %218 = vrcp.f32 %v65_v9 }
 0x170   :  { %v219_v13 = vpop.eup %218 }
 0x171   :  { %v67_v14 = vmul.f32 %v219_v13, %v217_v5 }
 0x173   :  { %v73_v15 = vrot.slane %v67_v14, %v72_v12 }
 0x175   :  { %90 = vperm.xlu0 %213, %v73_v15   ;;  %75 = vperm.xlu1 %211, %v73_v15  }
 0x179   :  { %212 = vset.pattern.permute.xlu1 %v345_v16  ;;  %215 = vset.pattern.permute.xlu0 %v346_v17 }
 0x17a   :  { %82 = vperm.xlu1 %212, %v73_v15  }
 0x17e   :  { %214 = vset.pattern.permute.xlu1 %v346_v17 }
 0x17f   :  { %98 = vperm.xlu1 %214, %v73_v15  }
 0x1f4   :  { %v76_v18 = vpop.permute.xlu1 %75  ;;  %v91_v23 = vpop.permute.xlu0 %90 }
 0x1f5   :  { %v78_v25 = vmul.f32 %v76_v18, %v68_v19  ;;  %v93_v28 = vmul.f32 %v91_v23, %v88_v22 }
 0x1f9   :  { %v83_v24 = vpop.permute.xlu1 %82 }
 0x1fa   :  { %v85_v26 = vmul.f32 %v83_v24, %v80_v20 }
 0x1fc   :  { %v86_v29 = vadd.f32 %v85_v26, %v78_v25 }
 0x1fe   :  { %v94_v31 = vadd.f32 %v93_v28, %v86_v29  ;;  %v99_v32 = vpop.permute.xlu1 %98 }
 0x1ff   :  { %v101_v33 = vmul.f32 %v99_v32, %v96_v30 }
 0x201   :  { %v102_v37 = vadd.f32 %v101_v33, %v94_v31 }
 0x203   :  { %103 = vst [vmem:[#allocation9] sm:$0xff] %v102_v37  ;;  %v107_v39 = vmul.f32 %v106_v34, %v102_v37 }
 0x205   :  { %v109_v41 = vsub.f32 %v107_v39, %v108_v38  ;;  %v112_v43 = vsub.f32 %v107_v39, %v111_v40 }
 0x207   :  { %v116_v42 = vsel %vm115_vm1, %v109_v41, -1e+12  ;;  %v117_v44 = vsel %vm115_vm1, %v112_v43, -1e+12 }
 0x208   :  { %118 = vmax.xlane.f32.xlu1 %v116_v42 }
 0x20c   :  { %133 = vmax.xlane.f32.xlu1 %v117_v44 }
 0x295   :  { %v119_v45 = vpop.xlane.xlu1 %118 }
 0x296   :  { %v120_v46 = vmax.f32 %v119_v45, 0.0 }
 0x298   :  { %v121_v47 = vsub.f32 %v116_v42, %v120_v46  ;;  %v126_v55 = vsub.f32 0.0, %v120_v46 }
 0x299   :  { %v134_v48 = vpop.xlane.xlu1 %133 }
 0x29a   :  { %v122_v49 = vmul.f32 1.442695, %v121_v47  ;;  %v135_v50 = vmax.f32 %v134_v48, 0.0  ;;  %v127_v56 = vmul.f32 1.442695, %v126_v55 }
 0x29c   :  { %220 = vpow2.f32 %v122_v49  ;;  %v136_v51 = vsub.f32 %v117_v44, %v135_v50  ;;  %v141_v57 = vsub.f32 0.0, %v135_v50 }
 0x29e   :  { %v137_v52 = vmul.f32 1.442695, %v136_v51  ;;  %v142_v58 = vmul.f32 1.442695, %v141_v57 }
 0x2a0   :  { %222 = vpow2.f32 %v137_v52 }
 0x2a1   :  { %224 = vpow2.f32 %v127_v56 }
 0x2a2   :  { %226 = vpow2.f32 %v142_v58 }
 0x2a6   :  { %v221_v53 = vpop.eup %220 }
 0x2a7   :  { %124 = vadd.xlane.f32.xlu0 %v221_v53 }
 0x2aa   :  { %v223_v54 = vpop.eup %222 }
 0x2ab   :  { %139 = vadd.xlane.f32.xlu1 %v223_v54  ;;  %v225_v59 = vpop.eup %224 }
 0x2ac   :  { %v227_v62 = vpop.eup %226 }
 0x334   :  { %v125_v60 = vpop.xlane.xlu0 %124 }
 0x335   :  { %v129_v61 = vadd.f32 %v225_v59, %v125_v60 }
 0x337   :  { %228 = vlog2.f32 %v129_v61 }
 0x338   :  { %v140_v63 = vpop.xlane.xlu1 %139 }
 0x339   :  { %v144_v0 = vadd.f32 %v227_v62, %v140_v63 }
 0x33b   :  { %230 = vlog2.f32 %v144_v0 }
 0x341   :  { %v229_v1 = vpop.eup %228 }
 0x342   :  { %v131_v2 = vmul.f32 0.6931472, %v229_v1 }
 0x344   :  { %v132_v5 = vadd.f32 %v131_v2, %v120_v46 }
 0x345   :  { %v231_v3 = vpop.eup %230 }
 0x346   :  { %v146_v4 = vmul.f32 0.6931472, %v231_v3 }
 0x348   :  { %v147_v6 = vadd.f32 %v146_v4, %v135_v50 }
 0x34a   :  { %v148_v7 = vadd.f32 %v147_v6, %v132_v5 }
 0x34c   :  { %v155_v8 = vsel %vm154_vm2, %v148_v7, 0.0 }
 0x34d   :  { %v157_v9 = vsel %vm156_vm3, %v155_v8, 0.0 }
 0x34e   :  { %158 = vadd.xlane.f32.xlu1 %v157_v9 }
 0x34f   :  { %309 = shalt.err (!%p306_p0)
}
 0x350   :  { %s310_s30 = scalar_lea.hbm %s441_s3, 128 }
 0x351   :  { %p311_p1 = scmp.ne.s32.totalorder %s441_s3, %s310_s30  ;;  %p314_p2 = scmp.lt.u32.totalorder %s310_s30, %s441_s3 }
 0x353   :  { %p316_p3 = pnand %p314_p2, %p311_p1 }
 0x355   :  { %319 = shalt.err (!%p316_p3)
}
 0x356   :  { %178 = dma.vmem_to_hbm [thread:$0]  %s176_s26, 128, %s441_s3, [#allocation4]  }
 0x357   :  { %s320_s1 = scalar_lea.hbm %s442_s4, 16 }
 0x358   :  { %p321_p4 = scmp.ne.s32.totalorder %s442_s4, %s320_s1  ;;  %p324_p5 = scmp.lt.u32.totalorder %s320_s1, %s442_s4 }
 0x35a   :  { %p326_p6 = pnand %p324_p5, %p321_p4 }
 0x3db   :  { %v159_v10 = vpop.xlane.xlu1 %158 }
 0x3dc   :  { %v160_v11 = vrot.slane %v159_v10, 4 }
 0x3de   :  { %v161_v12 = vadd.f32 %v160_v11, %v159_v10 }
 0x3e0   :  { %v162_v13 = vrot.slane %v161_v12, 2 }
 0x3e2   :  { %v163_v14 = vadd.f32 %v162_v13, %v161_v12 }
 0x3e4   :  { %v164_v15 = vrot.slane %v163_v14, 1 }
 0x3e6   :  { %v165_v16 = vadd.f32 %v164_v15, %v163_v14 }
 0x3e8   :  { %198 = vpush %v165_v16 }
 0x419   :  { %s199_s11 = spop %198 }
 0x41a   :  { %168 = sst [smem:[#allocation10]] %s199_s11 }
 0x41b   :  { %329 = shalt.err (!%p326_p6)
}
 0x41c   :  { %s348_s17 = smov [#allocation10]  }
 0x41d   :  { %186 = dma.smem_to_hbm %s348_s17, 16, %s442_s4, [#allocation5]  }
 0x41e   :  { %334 = dma.done.wait [#allocation4], 128  }
 0x41f   :  { %335 = vsyncadd [#allocation4], 4294967168 }
 0x420   :  { %336 = dma.done.wait [#allocation5], 16  }
 0x421   :  { %337 = vsyncadd [#allocation5], 4294967280 }
 0x422   :  { %193 = sfence }
 0x423   :  { %194 = vsyncpa [#allocation3], 1 }
 0x424   :  { %195 = vsyncpa [#allocation7], 1 }
 0x425   :  { %196 = vsyncpa [#allocation4], 1 }
 0x426   :  { %197 = vsyncpa [#allocation5], 1 }

</bundles_post_ra>
